<compile_context>
chip_gen: v6e
topology: v6e:2x2x1
jax: 0.10.0
libtpu: 0.0.40
codegen_flags: <defaults>
</compile_context>

<pallas_src>
import functools

import jax
import jax.numpy as jnp
from jax.experimental import pallas as pl
from jax.experimental.pallas import tpu as pltpu


def vae_encoder_kernel(x_ref, w1_ref, b1_ref, wml_ref, bml_ref, eps_ref, out_ref):
    latent = eps_ref.shape[-1]

    # h = relu(x @ W1 + b1): cast x -> bf16 in-kernel (VPU has slack),
    # bf16 MXU operands, f32 accumulation, f32 epilogue.
    x_bf = x_ref[...].astype(jnp.bfloat16)
    h = jnp.dot(x_bf, w1_ref[...], preferred_element_type=jnp.float32)
    h = jnp.maximum(h + b1_ref[...], 0.0)

    # Fused [mu | logvar] projection, f32 operands (tiny matmul, tighter z).
    ml = jnp.dot(h, wml_ref[...], preferred_element_type=jnp.float32) + bml_ref[...]
    mu = ml[:, :latent]
    logvar = ml[:, latent:]

    # std = exp(0.5 * logvar); z = mu + eps * std
    std = jnp.exp(0.5 * logvar)
    z = mu + eps_ref[...] * std

    # Output slab: [ mu | logvar | z ].  ml goes straight through (it is
    # already lane-contiguous from the matmul); no concatenate/lane rotates.
    out_ref[:, : 2 * latent] = ml
    out_ref[:, 2 * latent :] = z
    # TODO(synk): if latent stays tiny and B grows very large, a transposed
    # lane-dense output ([3*latent, B]) would avoid masked partial stores.


def _pick_tile_b(B):
    """Few, big grid steps; prefer an even step count for v7x 2-TC sharding."""
    if B % 16 == 0 and B <= 4096:
        return B // 2          # grid=(2,)
    if B % 8 == 0:
        return min(B, 2048) if B % min(B, 2048) == 0 else B
    return B                   # single full-array block (always legal)


def prepare_params(params):
    """One-time parameter prep (outside the per-call path): fuse mu/logvar
    projections and cast the big first-layer weight to bf16."""
    return {
        "w1": params["w1"].astype(jnp.bfloat16),
        "b1": params["b1"],
        "wml": jnp.concatenate([params["wmu"], params["wlv"]], axis=1),  # f32
        "bml": jnp.concatenate([params["bmu"], params["blv"]], axis=1),  # f32
    }


@functools.partial(jax.jit, static_argnames=("tile_b",))
def vae_encoder(x, prepped, eps, *, tile_b=None):
    """x: [B, input_dim] f32.  prepped: output of prepare_params.
    eps: [B, latent] f32.  Returns (z, mu, logvar), each [B, latent] f32."""
    B, input_dim = x.shape
    hidden_dim = prepped["w1"].shape[1]
    latent_dim = prepped["wml"].shape[1] // 2

    if tile_b is None:
        tile_b = _pick_tile_b(B)
    tile_b = min(tile_b, B)

    # Pad ragged batches up to a tile multiple (sliced off below).
    n_tiles = pl.cdiv(B, tile_b)
    Bp = n_tiles * tile_b
    if Bp != B:
        x = jnp.pad(x, ((0, Bp - B), (0, 0)))
        eps = jnp.pad(eps, ((0, Bp - B), (0, 0)))

    out = pl.pallas_call(
        vae_encoder_kernel,
        out_shape=jax.ShapeDtypeStruct((Bp, 3 * latent_dim), jnp.float32),
        grid=(n_tiles,),
        in_specs=[
            pl.BlockSpec((tile_b, input_dim), lambda i: (i, 0)),           # x tile (f32)
            pl.BlockSpec((input_dim, hidden_dim), lambda i: (0, 0)),       # W1 bf16 (pinned)
            pl.BlockSpec((1, hidden_dim), lambda i: (0, 0)),               # b1 (pinned)
            pl.BlockSpec((hidden_dim, 2 * latent_dim), lambda i: (0, 0)),  # W_mu|lv f32 (pinned)
            pl.BlockSpec((1, 2 * latent_dim), lambda i: (0, 0)),           # b_mu|lv (pinned)
            pl.BlockSpec((tile_b, latent_dim), lambda i: (i, 0)),          # eps tile
        ],
        out_specs=pl.BlockSpec((tile_b, 3 * latent_dim), lambda i: (i, 0)),
        compiler_params=pltpu.CompilerParams(
            dimension_semantics=("parallel",),   # v7x 2-TC sharding of batch axis
            vmem_limit_bytes=32 * 1024 * 1024,   # modest; safe on v5e/v6e/v7x
        ),
    )(x, prepped["w1"], prepped["b1"], prepped["wml"], prepped["bml"], eps)

    mu = out[:B, :latent_dim]
    logvar = out[:B, latent_dim:2 * latent_dim]
    z = out[:B, 2 * latent_dim:]
    return z, mu, logvar


def init_params(key, input_dim, hidden_dim, latent_dim):
    """Deterministic synthetic params. Weights stored pre-transposed ([in, out])."""
    k1, k2, k3, k4, k5, k6 = jax.random.split(key, 6)
    s1 = 1.0 / jnp.sqrt(input_dim)
    s2 = 1.0 / jnp.sqrt(hidden_dim)
    return {
        "w1":  jax.random.uniform(k1, (input_dim, hidden_dim), jnp.float32, -s1, s1),
        "b1":  jax.random.uniform(k2, (1, hidden_dim), jnp.float32, -s1, s1),
        "wmu": jax.random.uniform(k3, (hidden_dim, latent_dim), jnp.float32, -s2, s2),
        "bmu": jax.random.uniform(k4, (1, latent_dim), jnp.float32, -s2, s2),
        "wlv": jax.random.uniform(k5, (hidden_dim, latent_dim), jnp.float32, -s2, s2),
        "blv": jax.random.uniform(k6, (1, latent_dim), jnp.float32, -s2, s2),
    }


def reference(x, params, eps):
    """Pure-JAX f32 reference matching the PyTorch module math."""
    h = jnp.maximum(x @ params["w1"] + params["b1"], 0.0)
    mu = h @ params["wmu"] + params["bmu"]
    logvar = h @ params["wlv"] + params["blv"]
    std = jnp.exp(0.5 * logvar)
    return mu + eps * std, mu, logvar


if __name__ == "__main__":
    # Small shapes consistent with the module (hidden_dim=256 is the module default).
    B, input_dim, hidden_dim, latent_dim = 128, 32, 256, 16

    key = jax.random.PRNGKey(0)
    kx, kp, ke = jax.random.split(key, 3)

    x = jax.random.normal(kx, (B, input_dim), dtype=jnp.float32)
    params = init_params(kp, input_dim, hidden_dim, latent_dim)
    eps = jax.random.normal(ke, (B, latent_dim), dtype=jnp.float32)  # randn_like(std)

    prepped = prepare_params(params)          # one-time fusion + bf16 cast of W1
    prepped = jax.block_until_ready(prepped)

    z, mu, logvar = vae_encoder(x, prepped, eps)   # tile_b auto -> grid=(2,)
    jax.block_until_ready((z, mu, logvar))

    z_ref, mu_ref, lv_ref = reference(x, params, eps)
    # bf16 first-layer matmul (f32 accumulation, f32 second projection)
    # -> modest tolerance vs. the all-f32 reference.
    assert jnp.allclose(mu, mu_ref, atol=5e-2, rtol=5e-2)
    assert jnp.allclose(logvar, lv_ref, atol=5e-2, rtol=5e-2)
    assert jnp.allclose(z, z_ref, atol=5e-2, rtol=5e-2)

    print("KERNEL_OK")
</pallas_src>

<mosaic_0001>
module attributes {stable_mosaic.version = 11 : i64} {
  func.func @vae_encoder_kernel(%arg0: i32, %arg1: memref<64x32xf32, #tpu.memory_space<vmem>>, %arg2: memref<32x256xbf16, #tpu.memory_space<vmem>>, %arg3: memref<1x256xf32, #tpu.memory_space<vmem>>, %arg4: memref<256x32xf32, #tpu.memory_space<vmem>>, %arg5: memref<1x32xf32, #tpu.memory_space<vmem>>, %arg6: memref<64x16xf32, #tpu.memory_space<vmem>>, %arg7: memref<64x48xf32, #tpu.memory_space<vmem>>) attributes {dimension_semantics = [#tpu.dimension_semantics<parallel>], iteration_bounds = array<i64: 2>, scalar_prefetch = 0 : i64, scratch_operands = 0 : i64, tpu.core_type = #tpu.core_type<tc>, window_params = [{transform_indices = @transform_0, window_bounds = array<i64: 64, 32>}, {pipeline_mode = #tpu.pipeline_mode<synchronous>, transform_indices = @transform_1, window_bounds = array<i64: 32, 256>}, {pipeline_mode = #tpu.pipeline_mode<synchronous>, transform_indices = @transform_2, window_bounds = array<i64: 1, 256>}, {pipeline_mode = #tpu.pipeline_mode<synchronous>, transform_indices = @transform_3, window_bounds = array<i64: 256, 32>}, {pipeline_mode = #tpu.pipeline_mode<synchronous>, transform_indices = @transform_4, window_bounds = array<i64: 1, 32>}, {transform_indices = @transform_5, window_bounds = array<i64: 64, 16>}, {transform_indices = @transform_6, window_bounds = array<i64: 64, 48>}]} {
    %c0 = arith.constant 0 : index
    %c0_0 = arith.constant 0 : index
    %0 = vector.load %arg1[%c0, %c0_0] : memref<64x32xf32, #tpu.memory_space<vmem>>, vector<64x32xf32>
    %1 = arith.truncf %0 : vector<64x32xf32> to vector<64x32xbf16>
    %c0_1 = arith.constant 0 : index
    %c0_2 = arith.constant 0 : index
    %2 = vector.load %arg2[%c0_1, %c0_2] : memref<32x256xbf16, #tpu.memory_space<vmem>>, vector<32x256xbf16>
    %cst = arith.constant dense<0.000000e+00> : vector<64x256xf32>
    %3 = tpu.matmul %1, %2, %cst {dimension_numbers = #tpu.dot_dimension_numbers<[1], [0], [0], [1], [0, 0, 1, 1], [], []>} : vector<64x32xbf16>, vector<32x256xbf16>, vector<64x256xf32> -> vector<64x256xf32>
    %c0_3 = arith.constant 0 : index
    %c0_4 = arith.constant 0 : index
    %4 = vector.load %arg3[%c0_3, %c0_4] : memref<1x256xf32, #tpu.memory_space<vmem>>, vector<1x256xf32>
    %5 = vector.broadcast %4 : vector<1x256xf32> to vector<64x256xf32>
    %6 = arith.addf %3, %5 : vector<64x256xf32>
    %cst_5 = arith.constant 0.000000e+00 : f32
    %7 = vector.broadcast %cst_5 : f32 to vector<64x256xf32>
    %8 = arith.maximumf %6, %7 : vector<64x256xf32>
    %c0_6 = arith.constant 0 : index
    %c0_7 = arith.constant 0 : index
    %9 = vector.load %arg4[%c0_6, %c0_7] : memref<256x32xf32, #tpu.memory_space<vmem>>, vector<256x32xf32>
    %cst_8 = arith.constant dense<0.000000e+00> : vector<64x32xf32>
    %10 = tpu.matmul %8, %9, %cst_8 {dimension_numbers = #tpu.dot_dimension_numbers<[1], [0], [0], [1], [0, 0, 1, 1], [], []>} : vector<64x256xf32>, vector<256x32xf32>, vector<64x32xf32> -> vector<64x32xf32>
    %c0_9 = arith.constant 0 : index
    %c0_10 = arith.constant 0 : index
    %11 = vector.load %arg5[%c0_9, %c0_10] : memref<1x32xf32, #tpu.memory_space<vmem>>, vector<1x32xf32>
    %12 = vector.broadcast %11 : vector<1x32xf32> to vector<64x32xf32>
    %13 = arith.addf %10, %12 : vector<64x32xf32>
    %14 = vector.extract_strided_slice %13 {offsets = [0, 0], sizes = [64, 16], strides = [1, 1]} : vector<64x32xf32> to vector<64x16xf32>
    %15 = vector.extract_strided_slice %13 {offsets = [0, 16], sizes = [64, 16], strides = [1, 1]} : vector<64x32xf32> to vector<64x16xf32>
    %cst_11 = arith.constant 5.000000e-01 : f32
    %16 = vector.broadcast %cst_11 : f32 to vector<64x16xf32>
    %17 = arith.mulf %16, %15 : vector<64x16xf32>
    %18 = math.exp %17 : vector<64x16xf32>
    %c0_12 = arith.constant 0 : index
    %c0_13 = arith.constant 0 : index
    %19 = vector.load %arg6[%c0_12, %c0_13] : memref<64x16xf32, #tpu.memory_space<vmem>>, vector<64x16xf32>
    %20 = arith.mulf %19, %18 : vector<64x16xf32>
    %21 = arith.addf %14, %20 : vector<64x16xf32>
    %c0_14 = arith.constant 0 : index
    %c0_15 = arith.constant 0 : index
    %22 = vector.load %arg7[%c0_14, %c0_15] : memref<64x48xf32, #tpu.memory_space<vmem>>, vector<64x32xf32>
    tpu.vector_store %arg7[%c0_14, %c0_15], %13 {strides = array<i32>} : memref<64x48xf32, #tpu.memory_space<vmem>>, vector<64x32xf32>,
    %c0_16 = arith.constant 0 : index
    %c32 = arith.constant 32 : index
    %23 = vector.load %arg7[%c0_16, %c32] : memref<64x48xf32, #tpu.memory_space<vmem>>, vector<64x16xf32>
    tpu.vector_store %arg7[%c0_16, %c32], %21 {strides = array<i32>} : memref<64x48xf32, #tpu.memory_space<vmem>>, vector<64x16xf32>,
    return
  }
  func.func @transform_0(%arg0: i32) -> (i32, i32) {
    %c0_i32 = arith.constant 0 : i32
    %c0_i32_0 = arith.constant 0 : i32
    return %arg0, %c0_i32 : i32, i32
  }
  func.func @transform_1(%arg0: i32) -> (i32, i32) {
    %c0_i32 = arith.constant 0 : i32
    %c0_i32_0 = arith.constant 0 : i32
    %c0_i32_1 = arith.constant 0 : i32
    return %c0_i32, %c0_i32_0 : i32, i32
  }
  func.func @transform_2(%arg0: i32) -> (i32, i32) {
    %c0_i32 = arith.constant 0 : i32
    %c0_i32_0 = arith.constant 0 : i32
    %c0_i32_1 = arith.constant 0 : i32
    return %c0_i32, %c0_i32_0 : i32, i32
  }
  func.func @transform_3(%arg0: i32) -> (i32, i32) {
    %c0_i32 = arith.constant 0 : i32
    %c0_i32_0 = arith.constant 0 : i32
    %c0_i32_1 = arith.constant 0 : i32
    return %c0_i32, %c0_i32_0 : i32, i32
  }
  func.func @transform_4(%arg0: i32) -> (i32, i32) {
    %c0_i32 = arith.constant 0 : i32
    %c0_i32_0 = arith.constant 0 : i32
    %c0_i32_1 = arith.constant 0 : i32
    return %c0_i32, %c0_i32_0 : i32, i32
  }
  func.func @transform_5(%arg0: i32) -> (i32, i32) {
    %c0_i32 = arith.constant 0 : i32
    %c0_i32_0 = arith.constant 0 : i32
    return %arg0, %c0_i32 : i32, i32
  }
  func.func @transform_6(%arg0: i32) -> (i32, i32) {
    %c0_i32 = arith.constant 0 : i32
    %c0_i32_0 = arith.constant 0 : i32
    return %arg0, %c0_i32 : i32, i32
  }
}

</mosaic_0001>

<bundles_post_ra>
// kernel: vae_encoder.1
= control target key start
LH: loop header
LB: loop body
LE: loop exit
PB: predicated region body
PF: predicated region fallthrough
CT: control target
= control target key end

     0   :  { %s958_s21 = smov 0   ;;  %s1215_s0 = inlined_call_operand.vmem [shape: f32[128,32], index: 0, kind: input, shape index: {}]   ;;  %s1216_s1 = inlined_call_operand.vmem [shape: bf16[32,256], index: 1, kind: input, shape index: {}]   ;;  %s1217_s2 = inlined_call_operand.vmem [shape: f32[1,256], index: 2, kind: input, shape index: {}]   ;;  %s1218_s3 = inlined_call_operand.vmem [shape: f32[256,32], index: 3, kind: input, shape index: {}]   ;;  %s1219_s4 = inlined_call_operand.vmem [shape: f32[1,32], index: 4, kind: input, shape index: {}]   ;;  %s1220_s5 = inlined_call_operand.vmem [shape: f32[128,16], index: 5, kind: input, shape index: {}]   ;;  %s1221_s6 = inlined_call_operand.vmem [shape: f32[128,48], index: 6, kind: output, shape index: {}]  }
   0x1 LB: > { %s769_s22 = sadd.s32 4294967295, %s918_s21   ;;  %p773_p0 = scmp.ge.s32.totalorder %s918_s21, 1  ;;  %s918_s21 = sphi %s958_s21, %s16_s21  }
   0x2   : > { %p224_p1 = scmp.lt.s32.totalorder %s918_s21, 3 }
   0x4   : > { %p225_p2 = pnand %p773_p0, %p224_p1 }
   0x5   : > { %s774_s25 = sshll.u32 (!%p225_p2), %s769_s22, 3  ;;  %s921_s17 = smov (!%p225_p2), 112  }
   0x6   : > { %228 = sbr.rel (%p225_p2) target bundleno = 700 (0x2bc), region = 44  ;;  %p260_p3 = scmp.lt.s32.totalorder (!%p225_p2), %s774_s25, 15 }
   0x7   : > { %s922_s23 = smov (!%p225_p2), 32  }
   0xb   : > { %v890_v0 = vld [vmem:[%s1216_s1 + $0x14] ss:$8 sps:$4 sm:$0xff]   ;;  %v892_v1 = vld [vmem:[%s1216_s1 + $0x10] ss:$8 sps:$4 sm:$0xff]   ;;  %v920_v2 = vmov 0   ;;  %s1223_s25 = smov (!%p260_p3, %s774_s25), 15  ;;  %v296_v49 = vlaneseq }
   0xc   : > { %371 = vmatprep.mubr.bf16.mxu0 %v920_v2  ;;  %351 = vmatprep.subr.bf16.mxu0 %v890_v0  ;;  %v893_v3 = vld [vmem:[%s1216_s1 + $0x4] ss:$8 sps:$4 sm:$0xff]   ;;  %v459_v4 = vld [vmem:[%s1218_s3 + $0xf8] sm:$0xff]  ;;  %v895_v5 = vld [vmem:[%s1216_s1] ss:$8 sps:$4 sm:$0xff]   ;;  %s988_s14 = sshll.u32 %s1223_s25, 3 }
   0xd   : > { %352 = vmatpush1.bf16.msra.mxu0 %v892_v1  ;;  %v443_v6 = vld [vmem:[%s1218_s3 + $0x78] sm:$0xff]  ;;  %847 = vmatprep.subr.mxu1 %v459_v4  ;;  %v458_v7 = vld [vmem:[%s1218_s3 + $0xf0] sm:$0xff]  ;;  %s997_s19 = scalar_lea.vmem %s1215_s0, %s988_s14  ;;  %v457_v9 = vld [vmem:[%s1218_s3 + $0xe8] sm:$0xff]  ;;  %vm326_vm0 = vcmask 261120   ;;  %v297_v50 = vshrl.u32 %v296_v49, 7  ;;  %s1110_s16 = scalar_lea.vmem %s1221_s6, %s988_s14  ;;  %vm692_vm1 = vcmask 392448  }
   0xe   : > { %353 = vmatprep.subr.bf16.mxu0 %v893_v3  ;;  %863 = vmatpush3.msra.mxu1 %v443_v6  ;;  %v442_v8 = vld [vmem:[%s1218_s3 + $0x70] sm:$0xff]  ;;  %v278_v10 = vld [vmem:[%s997_s19] sm:$0xff]  ;;  %v279_v11 = vld [vmem:[%s997_s19 + $0x8] sm:$0xff]  ;;  %s1172_s22 = scalar_lea.vmem %s1220_s5, %s988_s14 }
   0xf   : > { %848 = vmatprep.subr.mxu1 %v458_v7  ;;  %v441_v12 = vld [vmem:[%s1218_s3 + $0x68] sm:$0xff]  ;;  %v286_v13 = vpack.c.bf16 %v279_v11, %v278_v10  ;;  %v456_v14 = vld [vmem:[%s1218_s3 + $0xe0] sm:$0xff]  ;;  %v280_v16 = vld [vmem:[%s997_s19 + $0x10] sm:$0xff]  ;;  %v298_v51 = vsub.s32 0, %v297_v50  ;;  %v302_v53 = vsub.s32 1, %v297_v50 }
  0x10   : > { %864 = vmatpush3.msra.mxu1 %v442_v8  ;;  %v440_v15 = vld [vmem:[%s1218_s3 + $0x60] sm:$0xff]  ;;  %v281_v17 = vld [vmem:[%s997_s19 + $0x18] sm:$0xff]  ;;  %v454_v20 = vld [vmem:[%s1218_s3 + $0xd0] sm:$0xff] }
  0x11   : > { %354 = vmatpush1.bf16.msra.mxu0 %v895_v5  ;;  %849 = vmatprep.subr.mxu1 %v457_v9  ;;  %v455_v18 = vld [vmem:[%s1218_s3 + $0xd8] sm:$0xff]  ;;  %v287_v21 = vpack.c.bf16 %v281_v17, %v280_v16  ;;  %v438_v22 = vld [vmem:[%s1218_s3 + $0x50] sm:$0xff]  ;;  %v453_v23 = vld [vmem:[%s1218_s3 + $0xc8] sm:$0xff] }
  0x12   : > { %791 = vmatprep.subr.mxu0 %v459_v4  ;;  %865 = vmatpush3.msra.mxu1 %v441_v12  ;;  %v439_v19 = vld [vmem:[%s1218_s3 + $0x58] sm:$0xff]  ;;  %v437_v24 = vld [vmem:[%s1218_s3 + $0x48] sm:$0xff]  ;;  %v282_v25 = vld [vmem:[%s997_s19 + $0x20] sm:$0xff] }
  0x13   : > { %850 = vmatprep.subr.mxu1 %v456_v14  ;;  %v283_v26 = vld [vmem:[%s997_s19 + $0x28] sm:$0xff]  ;;  %v452_v27 = vld [vmem:[%s1218_s3 + $0xc0] sm:$0xff]  ;;  %v451_v29 = vld [vmem:[%s1218_s3 + $0xb8] sm:$0xff] }
  0x14   : > { %784 = vmatmul.mubr.msk.bf16.vlgmr.msra.gmra.mxu0 %vm326_vm0, %v286_v13  ;;  %866 = vmatpush3.msra.mxu1 %v440_v15  ;;  %v436_v28 = vld [vmem:[%s1218_s3 + $0x40] sm:$0xff]  ;;  %v288_v30 = vpack.c.bf16 %v283_v26, %v282_v25  ;;  %v435_v31 = vld [vmem:[%s1218_s3 + $0x38] sm:$0xff]  ;;  %v450_v32 = vld [vmem:[%s1218_s3 + $0xb0] sm:$0xff] }
  0x15   : > { %381 = vmatprep.mubr.bf16.mxu0 %v920_v2  ;;  %792 = vmatpush3.msra.mxu0 %v443_v6  ;;  %v434_v33 = vld [vmem:[%s1218_s3 + $0x30] sm:$0xff]  ;;  %v285_v35 = vld [vmem:[%s997_s19 + $0x38] sm:$0xff]  ;;  %v449_v36 = vld [vmem:[%s1218_s3 + $0xa8] sm:$0xff] }
  0x16   : > { %793 = vmatprep.subr.mxu0 %v458_v7  ;;  %851 = vmatprep.subr.mxu1 %v455_v18  ;;  %v284_v34 = vld [vmem:[%s997_s19 + $0x30] sm:$0xff]  ;;  %v433_v37 = vld [vmem:[%s1218_s3 + $0x28] sm:$0xff]  ;;  %v448_v38 = vld [vmem:[%s1218_s3 + $0xa0] sm:$0xff] }
  0x17   : > { %794 = vmatpush3.msra.mxu0 %v442_v8  ;;  %867 = vmatpush3.msra.mxu1 %v439_v19  ;;  %v289_v39 = vpack.c.bf16 %v285_v35, %v284_v34  ;;  %v432_v40 = vld [vmem:[%s1218_s3 + $0x20] sm:$0xff]  ;;  %v447_v41 = vld [vmem:[%s1218_s3 + $0x98] sm:$0xff]  ;;  %v446_v43 = vld [vmem:[%s1218_s3 + $0x90] sm:$0xff] }
  0x18   : > { %795 = vmatprep.subr.mxu0 %v457_v9  ;;  %852 = vmatprep.subr.mxu1 %v454_v20  ;;  %v431_v42 = vld [vmem:[%s1218_s3 + $0x18] sm:$0xff]  ;;  %v430_v44 = vld [vmem:[%s1218_s3 + $0x10] sm:$0xff]  ;;  %v445_v45 = vld [vmem:[%s1218_s3 + $0x88] sm:$0xff] }
  0x19   : > { %796 = vmatpush3.msra.mxu0 %v441_v12  ;;  %868 = vmatpush3.msra.mxu1 %v438_v22  ;;  %v429_v46 = vld [vmem:[%s1218_s3 + $0x8] sm:$0xff]  ;;  %v444_v47 = vld [vmem:[%s1218_s3 + $0x80] sm:$0xff] }
  0x1a   : > { %797 = vmatprep.subr.mxu0 %v456_v14  ;;  %853 = vmatprep.subr.mxu1 %v453_v23  ;;  %v428_v48 = vld [vmem:[%s1218_s3] sm:$0xff] }
  0x1b   : > { %798 = vmatpush3.msra.mxu0 %v440_v15  ;;  %869 = vmatpush3.msra.mxu1 %v437_v24  ;;  %v294_v52 = vld [vmem:[%s1217_s2] sm:$0x3] }
  0x1c   : > { %785 = vmatmul.mubr.msk.bf16.gmra.mxu0 %vm326_vm0, %v287_v21  ;;  %799 = vmatprep.subr.mxu0 %v455_v18  ;;  %v299_v54 = vrot.slane %v294_v52, %v298_v51  ;;  %v303_v55 = vrot.slane %v294_v52, %v302_v53 }
  0x1d   : > { %391 = vmatprep.mubr.bf16.mxu0 %v920_v2  ;;  %800 = vmatpush3.msra.mxu0 %v439_v19 }
  0x1e   : > { %801 = vmatprep.subr.mxu0 %v454_v20  ;;  %854 = vmatprep.subr.mxu1 %v452_v27 }
  0x1f   : > { %802 = vmatpush3.msra.mxu0 %v438_v22  ;;  %870 = vmatpush3.msra.mxu1 %v436_v28 }
  0x20   : > { %803 = vmatprep.subr.mxu0 %v453_v23  ;;  %855 = vmatprep.subr.mxu1 %v451_v29 }
  0x21   : > { %804 = vmatpush3.msra.mxu0 %v437_v24  ;;  %871 = vmatpush3.msra.mxu1 %v435_v31 }
  0x22   : > { %805 = vmatprep.subr.mxu0 %v452_v27  ;;  %856 = vmatprep.subr.mxu1 %v450_v32 }
  0x23   : > { %806 = vmatpush3.msra.mxu0 %v436_v28  ;;  %872 = vmatpush3.msra.mxu1 %v434_v33 }
  0x24   : > { %786 = vmatmul.mubr.msk.bf16.gmra.mxu0 %vm326_vm0, %v288_v30  ;;  %807 = vmatprep.subr.mxu0 %v451_v29 }
  0x25   : > { %401 = vmatprep.mubr.bf16.mxu0 %v920_v2  ;;  %808 = vmatpush3.msra.mxu0 %v435_v31 }
  0x26   : > { %809 = vmatprep.subr.mxu0 %v450_v32  ;;  %857 = vmatprep.subr.mxu1 %v449_v36 }
  0x27   : > { %810 = vmatpush3.msra.mxu0 %v434_v33  ;;  %873 = vmatpush3.msra.mxu1 %v433_v37 }
  0x28   : > { %811 = vmatprep.subr.mxu0 %v449_v36  ;;  %858 = vmatprep.subr.mxu1 %v448_v38 }
  0x29   : > { %812 = vmatpush3.msra.mxu0 %v433_v37  ;;  %874 = vmatpush3.msra.mxu1 %v432_v40 }
  0x2a   : > { %813 = vmatprep.subr.mxu0 %v448_v38  ;;  %859 = vmatprep.subr.mxu1 %v447_v41 }
  0x2b   : > { %814 = vmatpush3.msra.mxu0 %v432_v40  ;;  %875 = vmatpush3.msra.mxu1 %v431_v42 }
  0x2c   : > { %787 = vmatmul.mubr.msk.bf16.gmra.mxu0 %vm326_vm0, %v289_v39  ;;  %815 = vmatprep.subr.mxu0 %v447_v41  ;;  %v1104_v41 = vld [vmem:[%s1219_s4] ss:$0 sm:$0xff] }
  0x2d   : > { %816 = vmatpush3.msra.mxu0 %v431_v42  ;;  %860 = vmatprep.subr.mxu1 %v446_v43 }
  0x2e   : > { %817 = vmatprep.subr.mxu0 %v446_v43  ;;  %876 = vmatpush3.msra.mxu1 %v430_v44 }
  0x2f   : > { %818 = vmatpush3.msra.mxu0 %v430_v44  ;;  %861 = vmatprep.subr.mxu1 %v445_v45 }
  0x30   : > { %819 = vmatprep.subr.mxu0 %v445_v45  ;;  %877 = vmatpush3.msra.mxu1 %v429_v46 }
  0x31   : > { %820 = vmatpush3.msra.mxu0 %v429_v46  ;;  %862 = vmatprep.subr.mxu1 %v444_v47 }
  0x32   : > { %821 = vmatprep.subr.mxu0 %v444_v47  ;;  %878 = vmatpush3.msra.mxu1 %v428_v48 }
  0x33   : > { %822 = vmatpush3.msra.mxu0 %v428_v48 }
  0xd4   : > { %v373_v56 = vpop.f32.mrf.mxu0 }
  0xd5   : > { %v374_v57 = vadd.f32 %v373_v56, %v299_v54 }
  0xd6   : > { %v375_v58 = vpop.f32.mrf.mxu0 }
  0xd7   : > { %v376_v59 = vadd.f32 %v375_v58, %v303_v55  ;;  %v412_v62 = vmax.f32 %v374_v57, 0.0 }
  0xd8   : > { %v377_v60 = vpop.f32.mrf.mxu0 }
  0xd9   : > { %v413_v61 = vmax.f32 %v376_v59, 0.0  ;;  %v378_v63 = vadd.f32 %v377_v60, %v299_v54 }
  0xda   : > { %v379_v0 = vpop.f32.mrf.mxu0 }
  0xdb   : > { %v380_v1 = vadd.f32 %v379_v0, %v303_v55  ;;  %531 = vmatprep.mubr.f32.mxu0 %v413_v61  ;;  %v414_v4 = vmax.f32 %v378_v63, 0.0 }
  0xdc   : > { %v383_v2 = vpop.f32.mrf.mxu0  ;;  %532 = vmatmul.mubr.f32.vlgmr.msra.gmra.mxu0 %v412_v62 }
  0xdd   : > { %v415_v3 = vmax.f32 %v380_v1, 0.0  ;;  %v384_v5 = vadd.f32 %v383_v2, %v299_v54 }
  0xde   : > { %v385_v6 = vpop.f32.mrf.mxu0 }
  0xdf   : > { %v386_v7 = vadd.f32 %v385_v6, %v303_v55  ;;  %536 = vmatprep.mubr.f32.mxu0 %v415_v3  ;;  %v416_v10 = vmax.f32 %v384_v5, 0.0 }
  0xe0   : > { %v387_v8 = vpop.f32.mrf.mxu0  ;;  %537 = vmatmul.mubr.f32.gmra.mxu0 %v414_v4 }
  0xe1   : > { %v417_v9 = vmax.f32 %v386_v7, 0.0  ;;  %v388_v11 = vadd.f32 %v387_v8, %v299_v54 }
  0xe2   : > { %v389_v12 = vpop.f32.mrf.mxu0 }
  0xe3   : > { %541 = vmatprep.mubr.f32.mxu0 %v417_v9  ;;  %v390_v13 = vadd.f32 %v389_v12, %v303_v55  ;;  %v418_v16 = vmax.f32 %v388_v11, 0.0 }
  0xe4   : > { %v393_v14 = vpop.f32.mrf.mxu0  ;;  %542 = vmatmul.mubr.f32.gmra.mxu0 %v416_v10 }
  0xe5   : > { %v419_v15 = vmax.f32 %v390_v13, 0.0  ;;  %v394_v17 = vadd.f32 %v393_v14, %v299_v54 }
  0xe6   : > { %v395_v18 = vpop.f32.mrf.mxu0 }
  0xe7   : > { %v396_v19 = vadd.f32 %v395_v18, %v303_v55  ;;  %546 = vmatprep.mubr.f32.mxu1 %v419_v15  ;;  %v420_v22 = vmax.f32 %v394_v17, 0.0 }
  0xe8   : > { %v397_v20 = vpop.f32.mrf.mxu0  ;;  %547 = vmatmul.mubr.f32.vlgmr.msra.gmra.mxu1 %v418_v16 }
  0xe9   : > { %v421_v21 = vmax.f32 %v396_v19, 0.0  ;;  %v398_v23 = vadd.f32 %v397_v20, %v299_v54 }
  0xea   : > { %v399_v24 = vpop.f32.mrf.mxu0 }
  0xeb   : > { %v400_v25 = vadd.f32 %v399_v24, %v303_v55  ;;  %551 = vmatprep.mubr.f32.mxu1 %v421_v21  ;;  %v422_v28 = vmax.f32 %v398_v23, 0.0 }
  0xec   : > { %v403_v26 = vpop.f32.mrf.mxu0  ;;  %552 = vmatmul.mubr.f32.gmra.mxu1 %v420_v22 }
  0xed   : > { %v423_v27 = vmax.f32 %v400_v25, 0.0  ;;  %v404_v29 = vadd.f32 %v403_v26, %v299_v54 }
  0xee   : > { %v405_v30 = vpop.f32.mrf.mxu0 }
  0xef   : > { %v406_v31 = vadd.f32 %v405_v30, %v303_v55  ;;  %556 = vmatprep.mubr.f32.mxu1 %v423_v27  ;;  %v424_v34 = vmax.f32 %v404_v29, 0.0 }
  0xf0   : > { %v407_v32 = vpop.f32.mrf.mxu0  ;;  %557 = vmatmul.mubr.f32.gmra.mxu1 %v422_v28 }
  0xf1   : > { %v425_v33 = vmax.f32 %v406_v31, 0.0  ;;  %v408_v35 = vadd.f32 %v407_v32, %v299_v54 }
  0xf2   : > { %v409_v36 = vpop.f32.mrf.mxu0 }
  0xf3   : > { %v410_v37 = vadd.f32 %v409_v36, %v303_v55  ;;  %561 = vmatprep.mubr.f32.mxu1 %v425_v33  ;;  %v426_v39 = vmax.f32 %v408_v35, 0.0  ;;  %v596_v33 = vld [vmem:[%s1172_s22] sm:$0xff]  ;;  %v597_v36 = vld [vmem:[%s1172_s22 + $0x8] sm:$0xff] }
  0xf4   : > { %562 = vmatmul.mubr.f32.gmra.mxu1 %v424_v34 }
  0xf5   : > { %v427_v38 = vmax.f32 %v410_v37, 0.0 }
  0xf7   : > { %566 = vmatprep.mubr.f32.mxu1 %v427_v38 }
  0xf8   : > { %567 = vmatmul.mubr.f32.gmra.mxu1 %v426_v39 }
 0x19c   : > { %v823_v40 = vpop.f32.mrf.mxu0 }
 0x19e   : > { %v824_v42 = vpop.f32.mrf.mxu0 }
 0x19f   : > { %v825_v43 = vadd.f32 %v824_v42, %v823_v40  ;;  %v598_v40 = vld [vmem:[%s1172_s22 + $0x10] sm:$0xff] }
 0x1a0   : > { %v826_v44 = vpop.f32.mrf.mxu0 }
 0x1a1   : > { %v1113_v45 = vadd.f32 %v825_v43, %v1104_v41 }
 0x1a2   : > { %v827_v46 = vpop.f32.mrf.mxu0 }
 0x1a3   : > { %v572_v47 = vmul.f32 0.5, %v1113_v45  ;;  %652 = vst.msk [vmem:[%s1110_s16] sm:$0xff] %vm326_vm0, %v1113_v45  ;;  %v828_v48 = vadd.f32 %v827_v46, %v826_v44  ;;  %v599_v44 = vld [vmem:[%s1172_s22 + $0x18] sm:$0xff] }
 0x1a4   : > { %v829_v49 = vpop.f32.mrf.mxu0 }
 0x1a5   : > { %v580_v50 = vmul.f32 1.442695, %v572_v47  ;;  %v1120_v51 = vadd.f32 %v828_v48, %v1104_v41 }
 0x1a6   : > { %v830_v52 = vpop.f32.mrf.mxu0 }
 0x1a7   : > { %896 = vpow2.f32 %v580_v50  ;;  %v573_v53 = vmul.f32 0.5, %v1120_v51  ;;  %653 = vst.msk [vmem:[%s1110_s16 + $0x8] sm:$0xff] %vm326_vm0, %v1120_v51  ;;  %v831_v54 = vadd.f32 %v830_v52, %v829_v49 }
 0x1a8   : > { %v832_v55 = vpop.f32.mrf.mxu1 }
 0x1a9   : > { %v582_v56 = vmul.f32 1.442695, %v573_v53  ;;  %v1127_v57 = vadd.f32 %v831_v54, %v1104_v41 }
 0x1aa   : > { %v833_v58 = vpop.f32.mrf.mxu1 }
 0x1ab   : > { %898 = vpow2.f32 %v582_v56  ;;  %v574_v59 = vmul.f32 0.5, %v1127_v57  ;;  %654 = vst.msk [vmem:[%s1110_s16 + $0x10] sm:$0xff] %vm326_vm0, %v1127_v57  ;;  %v834_v60 = vadd.f32 %v833_v58, %v832_v55  ;;  %v602_v56 = vld [vmem:[%s1172_s22 + $0x30] sm:$0xff] }
 0x1ac   : > { %v835_v61 = vpop.f32.mrf.mxu1 }
 0x1ad   : > { %v584_v62 = vmul.f32 1.442695, %v574_v59  ;;  %v1134_v63 = vadd.f32 %v834_v60, %v1104_v41  ;;  %v603_v60 = vld [vmem:[%s1172_s22 + $0x38] sm:$0xff] }
 0x1ae   : > { %v836_v0 = vpop.f32.mrf.mxu1 }
 0x1af   : > { %900 = vpow2.f32 %v584_v62  ;;  %v575_v1 = vmul.f32 0.5, %v1134_v63  ;;  %655 = vst.msk [vmem:[%s1110_s16 + $0x18] sm:$0xff] %vm326_vm0, %v1134_v63  ;;  %v837_v2 = vadd.f32 %v836_v0, %v835_v61 }
 0x1b0   : > { %v838_v3 = vpop.f32.mrf.mxu1 }
 0x1b1   : > { %v586_v4 = vmul.f32 1.442695, %v575_v1  ;;  %v1141_v5 = vadd.f32 %v837_v2, %v1104_v41 }
 0x1b2   : > { %v839_v6 = vpop.f32.mrf.mxu1 }
 0x1b3   : > { %902 = vpow2.f32 %v586_v4  ;;  %v576_v7 = vmul.f32 0.5, %v1141_v5  ;;  %656 = vst.msk [vmem:[%s1110_s16 + $0x20] sm:$0xff] %vm326_vm0, %v1141_v5  ;;  %v840_v8 = vadd.f32 %v839_v6, %v838_v3 }
 0x1b4   : > { %v897_v9 = vpop.eup %896  ;;  %v841_v10 = vpop.f32.mrf.mxu1 }
 0x1b5   : > { %v588_v11 = vmul.f32 1.442695, %v576_v7  ;;  %v1148_v12 = vadd.f32 %v840_v8, %v1104_v41  ;;  %612 = vrot.lane.b32.xlu0 %v897_v9, %s921_s17 }
 0x1b6   : > { %v842_v13 = vpop.f32.mrf.mxu1 }
 0x1b7   : > { %904 = vpow2.f32 %v588_v11  ;;  %v577_v14 = vmul.f32 0.5, %v1148_v12  ;;  %657 = vst.msk [vmem:[%s1110_s16 + $0x28] sm:$0xff] %vm326_vm0, %v1148_v12  ;;  %v843_v15 = vadd.f32 %v842_v13, %v841_v10 }
 0x1b8   : > { %v899_v16 = vpop.eup %898  ;;  %v844_v17 = vpop.f32.mrf.mxu1 }
 0x1b9   : > { %v590_v18 = vmul.f32 1.442695, %v577_v14  ;;  %v564_v19 = vadd.f32 %v843_v15, %v1104_v41  ;;  %614 = vrot.lane.b32.xlu0 %v899_v16, %s921_s17 }
 0x1ba   : > { %v845_v20 = vpop.f32.mrf.mxu1 }
 0x1bb   : > { %906 = vpow2.f32 %v590_v18  ;;  %v578_v21 = vmul.f32 0.5, %v564_v19  ;;  %658 = vst.msk [vmem:[%s1110_s16 + $0x30] sm:$0xff] %vm326_vm0, %v564_v19  ;;  %v846_v22 = vadd.f32 %v845_v20, %v844_v17 }
 0x1bc   : > { %v901_v23 = vpop.eup %900 }
 0x1bd   : > { %v592_v24 = vmul.f32 1.442695, %v578_v21  ;;  %v569_v25 = vadd.f32 %v846_v22, %v1104_v41  ;;  %616 = vrot.lane.b32.xlu1 %v901_v23, %s921_s17 }
 0x1bf   : > { %908 = vpow2.f32 %v592_v24  ;;  %v579_v26 = vmul.f32 0.5, %v569_v25  ;;  %659 = vst.msk [vmem:[%s1110_s16 + $0x38] sm:$0xff] %vm326_vm0, %v569_v25 }
 0x1c0   : > { %v903_v27 = vpop.eup %902 }
 0x1c1   : > { %v594_v28 = vmul.f32 1.442695, %v579_v26  ;;  %618 = vrot.lane.b32.xlu1 %v903_v27, %s921_s17 }
 0x1c3   : > { %910 = vpow2.f32 %v594_v28 }
 0x1c4   : > { %v905_v29 = vpop.eup %904 }
 0x1c5   : > { %620 = vrot.lane.b32.xlu0 %v905_v29, %s921_s17 }
 0x1c8   : > { %v907_v30 = vpop.eup %906 }
 0x1c9   : > { %622 = vrot.lane.b32.xlu1 %v907_v30, %s921_s17 }
 0x1cc   : > { %v909_v31 = vpop.eup %908 }
 0x1cd   : > { %624 = vrot.lane.b32.xlu0 %v909_v31, %s921_s17 }
 0x1d0   : > { %v911_v32 = vpop.eup %910 }
 0x1d1   : > { %626 = vrot.lane.b32.xlu1 %v911_v32, %s921_s17 }
 0x227   : > { %v613_v34 = vpop.permute.xlu0 %612 }
 0x228   : > { %v636_v35 = vmul.f32 %v613_v34, %v596_v33 }
 0x22a   : > { %v644_v37 = vadd.f32 %v636_v35, %v1113_v45  ;;  %v600_v45 = vld [vmem:[%s1172_s22 + $0x20] sm:$0xff] }
 0x22b   : > { %v615_v38 = vpop.permute.xlu0 %614 }
 0x22c   : > { %v637_v39 = vmul.f32 %v615_v38, %v597_v36  ;;  %668 = vrot.lane.b32.xlu0 %v644_v37, %s922_s23 }
 0x22e   : > { %v645_v41 = vadd.f32 %v637_v39, %v1120_v51  ;;  %v601_v51 = vld [vmem:[%s1172_s22 + $0x28] sm:$0xff] }
 0x22f   : > { %v617_v42 = vpop.permute.xlu1 %616 }
 0x230   : > { %v638_v43 = vmul.f32 %v617_v42, %v598_v40  ;;  %670 = vrot.lane.b32.xlu1 %v645_v41, %s922_s23 }
 0x232   : > { %v646_v46 = vadd.f32 %v638_v43, %v1127_v57 }
 0x233   : > { %v619_v47 = vpop.permute.xlu1 %618 }
 0x234   : > { %v639_v48 = vmul.f32 %v619_v47, %v599_v44  ;;  %672 = vrot.lane.b32.xlu0 %v646_v46, %s922_s23 }
 0x236   : > { %v647_v49 = vadd.f32 %v639_v48, %v1134_v63 }
 0x237   : > { %v621_v50 = vpop.permute.xlu0 %620 }
 0x238   : > { %v640_v52 = vmul.f32 %v621_v50, %v600_v45  ;;  %674 = vrot.lane.b32.xlu1 %v647_v49, %s922_s23 }
 0x23a   : > { %v648_v53 = vadd.f32 %v640_v52, %v1141_v5 }
 0x23b   : > { %v623_v54 = vpop.permute.xlu1 %622 }
 0x23c   : > { %v641_v55 = vmul.f32 %v623_v54, %v601_v51  ;;  %676 = vrot.lane.b32.xlu0 %v648_v53, %s922_s23 }
 0x23e   : > { %v649_v57 = vadd.f32 %v641_v55, %v1148_v12 }
 0x23f   : > { %v625_v58 = vpop.permute.xlu0 %624 }
 0x240   : > { %v642_v59 = vmul.f32 %v625_v58, %v602_v56  ;;  %678 = vrot.lane.b32.xlu1 %v649_v57, %s922_s23 }
 0x242   : > { %v650_v61 = vadd.f32 %v642_v59, %v564_v19 }
 0x243   : > { %v627_v62 = vpop.permute.xlu1 %626 }
 0x244   : > { %v643_v63 = vmul.f32 %v627_v62, %v603_v60  ;;  %680 = vrot.lane.b32.xlu0 %v650_v61, %s922_s23 }
 0x246   : > { %v651_v0 = vadd.f32 %v643_v63, %v569_v25 }
 0x248   : > { %682 = vrot.lane.b32.xlu1 %v651_v0, %s922_s23 }
 0x29e   : > { %v669_v1 = vpop.permute.xlu0 %668 }
 0x29f   : > { %693 = vst.msk [vmem:[%s1110_s16] sm:$0xff] %vm692_vm1, %v669_v1 }
 0x2a2   : > { %v671_v2 = vpop.permute.xlu1 %670 }
 0x2a3   : > { %694 = vst.msk [vmem:[%s1110_s16 + $0x8] sm:$0xff] %vm692_vm1, %v671_v2 }
 0x2a6   : > { %v673_v3 = vpop.permute.xlu0 %672 }
 0x2a7   : > { %695 = vst.msk [vmem:[%s1110_s16 + $0x10] sm:$0xff] %vm692_vm1, %v673_v3 }
 0x2aa   : > { %v675_v4 = vpop.permute.xlu1 %674 }
 0x2ab   : > { %696 = vst.msk [vmem:[%s1110_s16 + $0x18] sm:$0xff] %vm692_vm1, %v675_v4 }
 0x2ae   : > { %v677_v5 = vpop.permute.xlu0 %676 }
 0x2af   : > { %697 = vst.msk [vmem:[%s1110_s16 + $0x20] sm:$0xff] %vm692_vm1, %v677_v5 }
 0x2b2   : > { %v679_v6 = vpop.permute.xlu1 %678 }
 0x2b3   : > { %698 = vst.msk [vmem:[%s1110_s16 + $0x28] sm:$0xff] %vm692_vm1, %v679_v6 }
 0x2b6   : > { %v681_v7 = vpop.permute.xlu0 %680 }
 0x2b7   : > { %699 = vst.msk [vmem:[%s1110_s16 + $0x30] sm:$0xff] %vm692_vm1, %v681_v7 }
 0x2ba   : > { %v683_v8 = vpop.permute.xlu1 %682 }
 0x2bb   : > { %700 = vst.msk [vmem:[%s1110_s16 + $0x38] sm:$0xff] %vm692_vm1, %v683_v8 }
 0x2bc PF: > { %s16_s21 = sadd.s32 1, %s918_s21  }
 0x2bd   : > { %p13_p4 = scmp.ge.s32.totalorder %s16_s21, 4  }
 0x2bf   :  { %15 = sbr.rel (!%p13_p4) target bundleno = 1 (0x1), region = 77 }

</bundles_post_ra>
